<compile_context>
chip_gen: v6e
topology: v6e:2x2x1
jax: 0.10.0
libtpu: 0.0.40
codegen_flags: <defaults>
</compile_context>

<pallas_src>
import jax
import jax.numpy as jnp
from jax.experimental import pallas as pl
from jax.experimental.pallas import tpu as pltpu


def _round_up(x, m):
    return ((x + m - 1) // m) * m


def _stats_kernel(x_ref, sum_ref, sq_ref, acc_s_ref, acc_q_ref):
    """Per-row sum / sum-of-squares over the pixel axis.

    Grid: (row_tiles [parallel], pixel_tiles [arbitrary]).
    Accumulates elementwise into (TR, TN) f32 scratch; does the cross-lane
    reduction only once, at the final pixel tile of each row tile.
    """
    t = pl.program_id(1)

    @pl.when(t == 0)
    def _init():
        acc_s_ref[...] = jnp.zeros_like(acc_s_ref)
        acc_q_ref[...] = jnp.zeros_like(acc_q_ref)

    xb = x_ref[...].astype(jnp.float32)          # (TR, TN)
    acc_s_ref[...] += xb
    acc_q_ref[...] += xb * xb

    @pl.when(t == pl.num_programs(1) - 1)
    def _finalize():
        sum_ref[...] = jnp.sum(acc_s_ref[...], axis=-1, keepdims=True)  # (TR, 1)
        sq_ref[...] = jnp.sum(acc_q_ref[...], axis=-1, keepdims=True)   # (TR, 1)


def _affine_kernel(scale_ref, shift_ref, x_ref, o_ref):
    """out = scale * x + shift with per-row (b, c) scale/shift (single FMA)."""
    xb = x_ref[...].astype(jnp.float32)                      # (TR, TN)
    o_ref[...] = (scale_ref[...] * xb + shift_ref[...]).astype(o_ref.dtype)


def conditional_batchnorm_forward(x_nchw, class_id, params, *, eps=1e-5,
                                  tile_r=256, tile_n=512):
    """x_nchw: (B, C, H, W); class_id: (B, K). Returns (B, C, H, W)."""
    B, C, H, W = x_nchw.shape
    N = H * W
    R = B * C

    # NCHW -> (R, N): reshape only, pixels land on the lane dim.
    x_rn = x_nchw.reshape(R, N)

    # Tile sizes: sublane tile multiple of 8, lane tile multiple of 128.
    TR = min(tile_r, _round_up(R, 8))
    TN = min(tile_n, _round_up(N, 128))
    R_pad = _round_up(R, TR)
    N_pad = _round_up(N, TN)
    if (R_pad, N_pad) != (R, N):
        # Zero padding: contributes 0 to sum / sumsq; sliced off at the end.
        x_rn = jnp.pad(x_rn, ((0, R_pad - R), (0, N_pad - N)))

    n_row_tiles = R_pad // TR
    n_col_tiles = N_pad // TN

    # Explicit VMEM budget (double-buffered x in/out + f32 scratch), capped
    # under v7x's 64 MiB physical VMEM.
    itemsize = jnp.dtype(x_nchw.dtype).itemsize
    pass1_bytes = 2 * TR * TN * itemsize + 2 * TR * TN * 4
    pass2_bytes = 2 * TR * TN * itemsize + 2 * TR * TN * itemsize
    vmem_limit = int(min(max(2 * max(pass1_bytes, pass2_bytes), 16 << 20),
                         48 << 20))

    # ---- pass 1: per-row (b, c) sum / sum-of-squares ----
    sum_r, sq_r = pl.pallas_call(
        _stats_kernel,
        out_shape=(jax.ShapeDtypeStruct((R_pad, 1), jnp.float32),
                   jax.ShapeDtypeStruct((R_pad, 1), jnp.float32)),
        grid=(n_row_tiles, n_col_tiles),
        in_specs=[pl.BlockSpec((TR, TN), lambda i, t: (i, t))],
        out_specs=(pl.BlockSpec((TR, 1), lambda i, t: (i, 0)),
                   pl.BlockSpec((TR, 1), lambda i, t: (i, 0))),
        scratch_shapes=[pltpu.VMEM((TR, TN), jnp.float32),
                        pltpu.VMEM((TR, TN), jnp.float32)],
        compiler_params=pltpu.CompilerParams(
            dimension_semantics=("parallel", "arbitrary"),
            vmem_limit_bytes=vmem_limit),
    )(x_rn)

    # ---- per-channel stats + class embedding, folded into per-row scale/shift
    #      (tiny (B, C)/(B, 2C) math: plain JAX, not per-tile kernel work) ----
    inv_count = 1.0 / float(B * N)                # unpadded count
    sum_bc = sum_r[:R, 0].reshape(B, C)
    sq_bc = sq_r[:R, 0].reshape(B, C)
    mean_c = jnp.sum(sum_bc, axis=0) * inv_count                  # (C,)
    var_c = jnp.sum(sq_bc, axis=0) * inv_count - mean_c * mean_c  # biased var
    inv_std_c = jax.lax.rsqrt(var_c + eps)                        # (C,)

    embed = (class_id.astype(jnp.float32)
             @ params["w"].astype(jnp.float32).T
             + params["b"].astype(jnp.float32))                   # (B, 2C)
    gamma = embed[:, :C]                                          # (B, C)
    beta = embed[:, C:]                                           # (B, C)
    scale = gamma * inv_std_c[None, :]                            # (B, C)
    shift = beta - scale * mean_c[None, :]                        # (B, C)

    scale_r = scale.reshape(R, 1)
    shift_r = shift.reshape(R, 1)
    if R_pad != R:
        scale_r = jnp.pad(scale_r, ((0, R_pad - R), (0, 0)))
        shift_r = jnp.pad(shift_r, ((0, R_pad - R), (0, 0)))

    # ---- pass 2: fused normalize + conditional affine (one FMA / element) ----
    out_rn = pl.pallas_call(
        _affine_kernel,
        out_shape=jax.ShapeDtypeStruct((R_pad, N_pad), x_nchw.dtype),
        grid=(n_row_tiles, n_col_tiles),
        in_specs=[
            pl.BlockSpec((TR, 1), lambda i, t: (i, 0)),           # scale rows
            pl.BlockSpec((TR, 1), lambda i, t: (i, 0)),           # shift rows
            pl.BlockSpec((TR, TN), lambda i, t: (i, t)),          # x tile
        ],
        out_specs=pl.BlockSpec((TR, TN), lambda i, t: (i, t)),
        compiler_params=pltpu.CompilerParams(
            dimension_semantics=("parallel", "parallel"),
            vmem_limit_bytes=vmem_limit),
    )(scale_r, shift_r, x_rn)

    return out_rn[:R, :N].reshape(B, C, H, W)


def init_params(key, in_channel, n_condition):
    """Synthetic params mirroring ConditionalBatchNorm.__init__.

    embed = nn.Linear(n_condition, 2*in_channel):
      weight (2C, K): first C columns 1, remaining 0 (module init), plus a tiny
      perturbation so both gamma and beta paths are exercised by the test;
      bias: default nn.Linear uniform init.
    """
    kw, kb = jax.random.split(key)
    w = jnp.concatenate(
        [jnp.ones((2 * in_channel, in_channel), jnp.float32),
         jnp.zeros((2 * in_channel, n_condition - in_channel), jnp.float32)],
        axis=1)
    w = w + 0.01 * jax.random.normal(kw, w.shape, jnp.float32)
    bound = 1.0 / float(n_condition) ** 0.5
    b = jax.random.uniform(kb, (2 * in_channel,), jnp.float32,
                           minval=-bound, maxval=bound)
    return {"w": w, "b": b}


def conditional_batchnorm_reference(x, class_id, params, eps=1e-5):
    """Pure-JAX reference mirroring the PyTorch forward (training-mode BN)."""
    C = x.shape[1]
    mean = jnp.mean(x, axis=(0, 2, 3), keepdims=True)
    var = jnp.mean(jnp.square(x - mean), axis=(0, 2, 3), keepdims=True)
    xhat = (x - mean) / jnp.sqrt(var + eps)
    embed = class_id @ params["w"].T + params["b"]            # (B, 2C)
    gamma = embed[:, :C][:, :, None, None]
    beta = embed[:, C:][:, :, None, None]
    return gamma * xhat + beta


if __name__ == "__main__":
    # Small shapes; N = 1024 pixels -> two 512-lane tiles, R = 8 rows.
    B, C, H, W = 2, 4, 32, 32
    n_condition = 148                # module default

    key = jax.random.PRNGKey(0)
    kx, kc, kp = jax.random.split(key, 3)
    x = jax.random.normal(kx, (B, C, H, W), jnp.float32)
    class_id = jax.random.normal(kc, (B, n_condition), jnp.float32)
    params = init_params(kp, C, n_condition)

    out = conditional_batchnorm_forward(x, class_id, params)
    out = jax.block_until_ready(out)

    ref = conditional_batchnorm_reference(x, class_id, params)
    assert out.shape == (B, C, H, W)
    assert jnp.allclose(out, ref, atol=1e-3, rtol=1e-3), (
        "mismatch vs reference; max abs err = "
        f"{float(jnp.max(jnp.abs(out - ref)))}")
    print("KERNEL_OK")
</pallas_src>

<mosaic_0001>
module attributes {stable_mosaic.version = 11 : i64} {
  func.func @_stats_kernel(%arg0: i32, %arg1: i32, %arg2: memref<8x512xf32, #tpu.memory_space<vmem>>, %arg3: memref<8x1xf32, #tpu.memory_space<vmem>>, %arg4: memref<8x1xf32, #tpu.memory_space<vmem>>, %arg5: memref<8x512xf32, #tpu.memory_space<vmem>>, %arg6: memref<8x512xf32, #tpu.memory_space<vmem>>) attributes {dimension_semantics = [#tpu.dimension_semantics<parallel>, #tpu.dimension_semantics<arbitrary>], iteration_bounds = array<i64: 1, 2>, scalar_prefetch = 0 : i64, scratch_operands = 2 : i64, tpu.core_type = #tpu.core_type<tc>, window_params = [{transform_indices = @transform_0, window_bounds = array<i64: 8, 512>}, {transform_indices = @transform_1, window_bounds = array<i64: 8, 1>}, {transform_indices = @transform_2, window_bounds = array<i64: 8, 1>}]} {
    %c0_i32 = arith.constant 0 : i32
    %0 = arith.cmpi eq, %arg1, %c0_i32 : i32
    %1 = arith.extui %0 : i1 to i32
    %c0_i32_0 = arith.constant 0 : i32
    %2 = arith.cmpi ne, %1, %c0_i32_0 : i32
    scf.if %2 {
      %cst = arith.constant 0.000000e+00 : f32
      %14 = vector.broadcast %cst : f32 to vector<8x512xf32>
      %c0_11 = arith.constant 0 : index
      %c0_12 = arith.constant 0 : index
      %15 = vector.load %arg5[%c0_11, %c0_12] : memref<8x512xf32, #tpu.memory_space<vmem>>, vector<8x512xf32>
      tpu.vector_store %arg5[%c0_11, %c0_12], %14 {strides = array<i32>} : memref<8x512xf32, #tpu.memory_space<vmem>>, vector<8x512xf32>,
      %cst_13 = arith.constant 0.000000e+00 : f32
      %16 = vector.broadcast %cst_13 : f32 to vector<8x512xf32>
      %c0_14 = arith.constant 0 : index
      %c0_15 = arith.constant 0 : index
      %17 = vector.load %arg6[%c0_14, %c0_15] : memref<8x512xf32, #tpu.memory_space<vmem>>, vector<8x512xf32>
      tpu.vector_store %arg6[%c0_14, %c0_15], %16 {strides = array<i32>} : memref<8x512xf32, #tpu.memory_space<vmem>>, vector<8x512xf32>,
    } else {
    }
    %c0 = arith.constant 0 : index
    %c0_1 = arith.constant 0 : index
    %3 = vector.load %arg2[%c0, %c0_1] : memref<8x512xf32, #tpu.memory_space<vmem>>, vector<8x512xf32>
    %c0_2 = arith.constant 0 : index
    %c0_3 = arith.constant 0 : index
    %4 = vector.load %arg5[%c0_2, %c0_3] : memref<8x512xf32, #tpu.memory_space<vmem>>, vector<8x512xf32>
    %5 = arith.addf %4, %3 : vector<8x512xf32>
    %c0_4 = arith.constant 0 : index
    %c0_5 = arith.constant 0 : index
    %6 = vector.load %arg5[%c0_4, %c0_5] : memref<8x512xf32, #tpu.memory_space<vmem>>, vector<8x512xf32>
    tpu.vector_store %arg5[%c0_4, %c0_5], %5 {strides = array<i32>} : memref<8x512xf32, #tpu.memory_space<vmem>>, vector<8x512xf32>,
    %c0_6 = arith.constant 0 : index
    %c0_7 = arith.constant 0 : index
    %7 = vector.load %arg6[%c0_6, %c0_7] : memref<8x512xf32, #tpu.memory_space<vmem>>, vector<8x512xf32>
    %8 = arith.mulf %3, %3 : vector<8x512xf32>
    %9 = arith.addf %7, %8 : vector<8x512xf32>
    %c0_8 = arith.constant 0 : index
    %c0_9 = arith.constant 0 : index
    %10 = vector.load %arg6[%c0_8, %c0_9] : memref<8x512xf32, #tpu.memory_space<vmem>>, vector<8x512xf32>
    tpu.vector_store %arg6[%c0_8, %c0_9], %9 {strides = array<i32>} : memref<8x512xf32, #tpu.memory_space<vmem>>, vector<8x512xf32>,
    %c1_i32 = arith.constant 1 : i32
    %11 = arith.cmpi eq, %arg1, %c1_i32 : i32
    %12 = arith.extui %11 : i1 to i32
    %c0_i32_10 = arith.constant 0 : i32
    %13 = arith.cmpi ne, %12, %c0_i32_10 : i32
    scf.if %13 {
      %c0_11 = arith.constant 0 : index
      %c0_12 = arith.constant 0 : index
      %14 = vector.load %arg5[%c0_11, %c0_12] : memref<8x512xf32, #tpu.memory_space<vmem>>, vector<8x512xf32>
      %cst = arith.constant dense<0.000000e+00> : vector<8xf32>
      %15 = vector.multi_reduction <add>, %14, %cst [1] : vector<8x512xf32> to vector<8xf32>
      %16 = vector.shape_cast %15 : vector<8xf32> to vector<8x1xf32>
      %c0_13 = arith.constant 0 : index
      %c0_14 = arith.constant 0 : index
      %17 = vector.load %arg3[%c0_13, %c0_14] : memref<8x1xf32, #tpu.memory_space<vmem>>, vector<8x1xf32>
      tpu.vector_store %arg3[%c0_13, %c0_14], %16 {strides = array<i32>} : memref<8x1xf32, #tpu.memory_space<vmem>>, vector<8x1xf32>,
      %c0_15 = arith.constant 0 : index
      %c0_16 = arith.constant 0 : index
      %18 = vector.load %arg6[%c0_15, %c0_16] : memref<8x512xf32, #tpu.memory_space<vmem>>, vector<8x512xf32>
      %cst_17 = arith.constant dense<0.000000e+00> : vector<8xf32>
      %19 = vector.multi_reduction <add>, %18, %cst_17 [1] : vector<8x512xf32> to vector<8xf32>
      %20 = vector.shape_cast %19 : vector<8xf32> to vector<8x1xf32>
      %c0_18 = arith.constant 0 : index
      %c0_19 = arith.constant 0 : index
      %21 = vector.load %arg4[%c0_18, %c0_19] : memref<8x1xf32, #tpu.memory_space<vmem>>, vector<8x1xf32>
      tpu.vector_store %arg4[%c0_18, %c0_19], %20 {strides = array<i32>} : memref<8x1xf32, #tpu.memory_space<vmem>>, vector<8x1xf32>,
    } else {
    }
    return
  }
  func.func @transform_0(%arg0: i32, %arg1: i32) -> (i32, i32) {
    %c0_i32 = arith.constant 0 : i32
    return %arg0, %arg1 : i32, i32
  }
  func.func @transform_1(%arg0: i32, %arg1: i32) -> (i32, i32) {
    %c0_i32 = arith.constant 0 : i32
    %c0_i32_0 = arith.constant 0 : i32
    return %arg0, %c0_i32 : i32, i32
  }
  func.func @transform_2(%arg0: i32, %arg1: i32) -> (i32, i32) {
    %c0_i32 = arith.constant 0 : i32
    %c0_i32_0 = arith.constant 0 : i32
    return %arg0, %c0_i32 : i32, i32
  }
}

</mosaic_0001>

<bundles_post_ra>
// kernel: tpu_custom_call.1
= control target key start
LH: loop header
LB: loop body
LE: loop exit
PB: predicated region body
PF: predicated region fallthrough
CT: control target
= control target key end

     0   :  { %8 = vsyncpa [#allocation5], 0  ;;  %s629_s0 = inlined_call_operand.hbm [shape: f32[8,1024], index: 0, kind: input, shape index: {}]   ;;  %s630_s1 = inlined_call_operand.vmem [shape: f32[8,1], index: 1, kind: output, shape index: {0}]   ;;  %s631_s2 = inlined_call_operand.vmem [shape: f32[8,1], index: 2, kind: output, shape index: {1}]  }
   0x1   :  { %10 = vsyncpa [#allocation5 + $0x1], 0  ;;  %s526_s9 = smov 0   ;;  %s528_s10 = smov 0  }
   0x2   :  { %s530_s11 = smov 0   ;;  %s532_s12 = smov 0  }
   0x3   :  { %s534_s13 = smov 0   ;;  %s536_s14 = smov 0  }
   0x4 LB: > { %s358_s15 = sadd.s32 4294967295, %s507_s14   ;;  %s25_s16 = sadd.s32 1, %s503_s13  ;;  %s507_s14 = sphi %s536_s14, %s16_s14   ;;  %s503_s13 = sphi %s534_s13, %s639_s13   ;;  %s499_s12 = sphi %s532_s12, %s638_s12   ;;  %s495_s11 = sphi %s530_s11, %s637_s11   ;;  %s491_s10 = sphi %s528_s10, %s636_s10   ;;  %s487_s9 = sphi %s526_s9, %s635_s9  }
   0x5   : > { %p26_p0 = scmp.ge.s32.totalorder %s25_s16, 2  ;;  %s37_s17 = sadd.s32 1, %s495_s11 }
   0x6   : > { %p44_p1 = scmp.ne.s32.totalorder %s495_s11, %s491_s10  ;;  %p45_p2 = scmp.eq.s32.totalorder %s507_s14, 0 }
   0x7   : > { %s641_s16 = smov (%p26_p0, %s25_s16), 0  ;;  %p50_p4 = scmp.ne.s32.totalorder %s491_s10, %s487_s9 }
   0x8   : > { %p562_p3 = por %p45_p2, %p44_p1  ;;  %s33_s19 = ssub.s32 %s503_s13, %s641_s16 }
   0x9   : > { %p51_p5 = scmp.eq.s32.totalorder %s358_s15, 0  ;;  %p35_p6 = scmp.eq.s32.totalorder %s33_s19, 0 }
   0xa   : > { %p379_p8 = scmp.lt.s32.totalorder %s507_s14, 2  ;;  %s126_s22 = sand.u32 1, %s495_s11  }
   0xb   : > { %p569_p7 = por %p51_p5, %p50_p4  ;;  %s372_s23 = sshll.u32 %s503_s13, 9 }
   0xc   : > { %s575_s21 = scalar_select %p35_p6, %s495_s11, %s37_s17  }
   0xd   : > { %s361_s24 = sshll.u32 %s126_s22, 5  ;;  %s138_s27 = scalar_lea.hbm %s629_s0, %s372_s23 }
   0xe   : > { %s130_s28 = scalar_lea.vmem [#allocation4], %s361_s24  ;;  %p584_p9 = pnand %p379_p8, %p562_p3 }
   0xf   : > { %s140_s29 = sshll.u32 %s130_s28, 4  ;;  %p364_p10 = scmp.ge.s32.totalorder %s507_s14, 1  ;;  %s141_s29 = int_to_ptr.vmem [resolvable:$true] %s140_s29 }
  0x10   : > { %p145_p11 = scmp.lt.s32.totalorder %s507_s14, 3  ;;  %s127_s3 = scalar_lea.sflag [#allocation5], %s126_s22 }
  0x11   : > { %p431_p12 = pneg %p584_p9  ;;  %s442_s4 = scalar_lea.vmem %s141_s29, 512 }
  0x12   : > { %p443_p13 = scmp.ne.s32.totalorder %s141_s29, %s442_s4  ;;  %s509_s5 = smov [#allocation4]  }
  0x13   : > { %s447_s6 = sshll.u32 %s509_s5, 4  ;;  %s448_s6 = int_to_ptr.vmem [resolvable:$false] %s447_s6 }
  0x14   : > { %p445_p0 = pnand %p443_p13, %p431_p12  ;;  %s449_s7 = scalar_lea.vmem %s448_s6, 1024 }
  0x15   : > { %p450_p2 = scmp.lt.s32.totalorder %s141_s29, %s448_s6  ;;  %p451_p3 = scmp.lt.s32.totalorder %s449_s7, %s442_s4 }
  0x16   : > { %p446_p1 = pneg %p445_p0 }
  0x17   : > { %p452_p4 = por %p451_p3, %p450_p2 }
  0x19   : > { %p453_p5 = pnand %p452_p4, %p446_p1 }
  0x1b   : > { %456 = shalt.err (!%p453_p5)
}
  0x1c   : > { %378 = dma.hbm_to_vmem [thread:$0]  (!%p584_p9), %s138_s27, 512, %s141_s29, %s127_s3  }
  0x1d   : > { %p146_p6 = pnand %p364_p10, %p145_p11 }
  0x1e   : > { %s151_s8 = sand.u32 (!%p146_p6), 1, %s491_s10  }
  0x1f   : > { %149 = sbr.rel (%p146_p6) target bundleno = 212 (0xd4), region = 24  ;;  %s365_s9 = sshll.u32 (!%p146_p6), %s151_s8, 5 }
  0x20   : > { %s152_s15 = scalar_lea.sflag (!%p146_p6), [#allocation5], %s151_s8  ;;  %s155_s17 = scalar_lea.vmem (!%p146_p6), [#allocation4], %s365_s9 }
  0x24   : > { %482 = dma.done.wait (%p569_p7), %s152_s15, 512  }
  0x25   : > { %484 = vsyncadd (%p569_p7), %s152_s15, 4294966784  ;;  %p366_p8 = scmp.ne.s32.totalorder %s499_s12, 0 }
  0x27   : > { %191 = sbr.rel (%p366_p8) target bundleno = 49 (0x31), region = 32 }
  0x2c   : > { %v510_v0 = vmov 0.0  }
  0x2d   : > { %192 = vst [vmem:[#allocation2 + $0x10] sm:$0xff] %v510_v0  ;;  %193 = vst [vmem:[#allocation2] sm:$0xff] %v510_v0 }
  0x2e   : > { %194 = vst [vmem:[#allocation2 + $0x18] sm:$0xff] %v510_v0  ;;  %195 = vst [vmem:[#allocation2 + $0x8] sm:$0xff] %v510_v0 }
  0x2f   : > { %196 = vst [vmem:[#allocation3] sm:$0xff] %v510_v0  ;;  %197 = vst [vmem:[#allocation3 + $0x18] sm:$0xff] %v510_v0 }
  0x30   : > { %198 = vst [vmem:[#allocation3 + $0x8] sm:$0xff] %v510_v0  ;;  %199 = vst [vmem:[#allocation3 + $0x10] sm:$0xff] %v510_v0 }
  0x31 PF: > { %v200_v1 = vld [vmem:[%s155_s17] sm:$0xff]  ;;  %v201_v3 = vld [vmem:[%s155_s17 + $0x8] sm:$0xff]  ;;  %v202_v6 = vld [vmem:[%s155_s17 + $0x10] sm:$0xff]  ;;  %p367_p7 = scmp.ne.s32.totalorder %s499_s12, 1 }
  0x32   : > { %v220_v8 = vmul.f32 %v200_v1, %v200_v1  ;;  %v221_v9 = vmul.f32 %v201_v3, %v201_v3  ;;  %v203_v12 = vld [vmem:[%s155_s17 + $0x18] sm:$0xff]  ;;  %v222_v15 = vmul.f32 %v202_v6, %v202_v6 }
  0x33   : > { %v223_v21 = vmul.f32 %v203_v12, %v203_v12 }
  0x34   : > { %v204_v2 = vld [vmem:[#allocation2 + $0x10] sm:$0xff]  ;;  %v205_v5 = vld [vmem:[#allocation2] sm:$0xff] }
  0x35   : > { %v208_v4 = vadd.f32 %v204_v2, %v200_v1  ;;  %v206_v7 = vld [vmem:[#allocation2 + $0x18] sm:$0xff]  ;;  %v209_v10 = vadd.f32 %v205_v5, %v201_v3  ;;  %v207_v13 = vld [vmem:[#allocation2 + $0x8] sm:$0xff] }
  0x36   : > { %v210_v11 = vadd.f32 %v206_v7, %v202_v6  ;;  %v216_v14 = vld [vmem:[#allocation3] sm:$0xff]  ;;  %v211_v16 = vadd.f32 %v207_v13, %v203_v12  ;;  %v217_v18 = vld [vmem:[#allocation3 + $0x18] sm:$0xff]  ;;  %235 = sbr.rel (%p367_p7) target bundleno = 212 (0xd4), region = 36 }
  0x37   : > { %212 = vst [vmem:[#allocation2 + $0x10] sm:$0xff] %v208_v4  ;;  %v224_v17 = vadd.f32 %v220_v8, %v216_v14  ;;  %v218_v19 = vld [vmem:[#allocation3 + $0x8] sm:$0xff]  ;;  %v219_v20 = vld [vmem:[#allocation3 + $0x10] sm:$0xff]  ;;  %213 = vst [vmem:[#allocation2] sm:$0xff] %v209_v10  ;;  %v225_v22 = vadd.f32 %v221_v9, %v217_v18 }
  0x38   : > { %214 = vst [vmem:[#allocation2 + $0x18] sm:$0xff] %v210_v11  ;;  %v226_v23 = vadd.f32 %v222_v15, %v218_v19  ;;  %215 = vst [vmem:[#allocation2 + $0x8] sm:$0xff] %v211_v16  ;;  %v227_v24 = vadd.f32 %v223_v21, %v219_v20 }
  0x39   : > { %228 = vst [vmem:[#allocation3] sm:$0xff] %v224_v17  ;;  %229 = vst [vmem:[#allocation3 + $0x18] sm:$0xff] %v225_v22 }
  0x3a   : > { %230 = vst [vmem:[#allocation3 + $0x8] sm:$0xff] %v226_v23  ;;  %231 = vst [vmem:[#allocation3 + $0x10] sm:$0xff] %v227_v24 }
  0x3b   : > { %vm245_vm0 = vcmask 7168  }
  0x3e   : > { %v236_v25 = vld [vmem:[#allocation2 + $0x10] sm:$0xff]  ;;  %v237_v26 = vld [vmem:[#allocation2] sm:$0xff] }
  0x3f   : > { %v238_v27 = vld [vmem:[#allocation2 + $0x18] sm:$0xff]  ;;  %v240_v28 = vadd.f32 %v237_v26, %v236_v25  ;;  %v239_v31 = vld [vmem:[#allocation2 + $0x8] sm:$0xff] }
  0x40   : > { %v247_v29 = vld [vmem:[#allocation3] sm:$0xff]  ;;  %v248_v30 = vld [vmem:[#allocation3 + $0x18] sm:$0xff] }
  0x41   : > { %v249_v32 = vld [vmem:[#allocation3 + $0x8] sm:$0xff]  ;;  %v251_v33 = vadd.f32 %v248_v30, %v247_v29  ;;  %v241_v34 = vadd.f32 %v240_v28, %v238_v27  ;;  %v250_v35 = vld [vmem:[#allocation3 + $0x10] sm:$0xff] }
  0x43   : > { %v252_v36 = vadd.f32 %v251_v33, %v249_v32  ;;  %v242_v37 = vadd.f32 %v241_v34, %v239_v31 }
  0x45   : > { %243 = vadd.xlane.f32.xlu0 %v242_v37  ;;  %v253_v38 = vadd.f32 %v252_v36, %v250_v35 }
  0x49   : > { %254 = vadd.xlane.f32.xlu0 %v253_v38 }
  0xce   : > { %v244_v39 = vpop.xlane.xlu0 %243 }
  0xcf   : > { %246 = vst.msk [vmem:[%s630_s1] sm:$0xff] %vm245_vm0, %v244_v39 }
  0xd2   : > { %v255_v40 = vpop.xlane.xlu0 %254 }
  0xd3   : > { %256 = vst.msk [vmem:[%s631_s2] sm:$0xff] %vm245_vm0, %v255_v40 }
  0xd4 PF: > { %s16_s14 = sadd.s32 1, %s507_s14   ;;  %s635_s9 = smov %s491_s10 }
  0xd5   : > { %p13_p9 = scmp.ge.s32.totalorder %s16_s14, 4   ;;  %s636_s10 = smov %s495_s11 }
  0xd6   : > { %s637_s11 = smov %s575_s21  ;;  %s638_s12 = smov %s503_s13 }
  0xd7   : > { %s639_s13 = smov %s641_s16  ;;  %15 = sbr.rel (!%p13_p9) target bundleno = 4 (0x4), region = 84 }
  0xdc   :  { %290 = vsyncpa [#allocation5], 1 }
  0xdd   :  { %292 = vsyncpa [#allocation5 + $0x1], 1 }

</bundles_post_ra>
